<compile_context>
chip_gen: v7x
topology: tpu7x:2x2x1
jax: 0.10.0
libtpu: 0.0.40
codegen_flags: <defaults>
</compile_context>

<pallas_src>
import jax
import jax.numpy as jnp
from jax.experimental import pallas as pl
from jax.experimental.pallas import tpu as pltpu

_LANE = 128      # lane width (last-dim tiling unit)
_SUBLANE = 8     # sublane width (second-to-last-dim tiling unit)


def _round_up(x, m):
    return (x + m - 1) // m * m


def _fused_mlp_bce_kernel(xT_ref, yT_ref, w1T_ref, b1_ref, w2_ref, b2_ref,
                          logits_ref, loss_el_ref):
    """One batch tile; batch dimension is on the lane axis.

    xT_ref:      (D_p, TILE_N) bf16  features (streamed per tile)
    yT_ref:      (1,   TILE_N) f32   labels   (streamed per tile)
    w1T_ref:     (H_p, D_p)    bf16  layer-1 weights, transposed (resident)
    b1_ref:      (H_p, 1)      f32   layer-1 bias (column)
    w2_ref:      (H_p, 1)      f32   layer-2 weights (column)
    b2_ref:      (1, 1)        f32   layer-2 bias (SMEM scalar)
    logits_ref:  (1, TILE_N)   f32   lane-dense logits
    loss_el_ref: (1, TILE_N)   f32   lane-dense per-sample BCE terms
    """
    # Layer 1 on the MXU: (H_p, D_p) @ (D_p, TILE_N) -> (H_p, TILE_N), f32 acc.
    hT = jnp.dot(w1T_ref[...], xT_ref[...], preferred_element_type=jnp.float32)
    hT = jnp.maximum(hT + b1_ref[...], 0.0)          # bias + ReLU in f32 (VPU)

    # Layer 2: broadcast-multiply (VPU) + cross-sublane reduce (XLU) instead of
    # an [N,H]@[H,1] matmul that would use <1% of the MXU output columns.
    z = jnp.sum(hT * w2_ref[...], axis=0, keepdims=True) + b2_ref[0, 0]  # (1, TILE_N)
    logits_ref[...] = z                                # lane-dense store

    # BCE-with-logits, numerically stable:
    #   loss = max(z,0) - z*y + log1p(exp(-|z|))
    # log1p computed with the Goldberg correction (full log1p accuracy using
    # only log/add/sub/div, which all lower cleanly in Mosaic).
    t = jnp.exp(-jnp.abs(z))
    u = 1.0 + t
    softplus = jnp.log(u) - ((u - 1.0) - t) / u        # == log1p(t)
    y = yT_ref[...]
    loss_el_ref[...] = jnp.maximum(z, 0.0) - z * y + softplus


def model_with_loss(x, y, w1, b1, w2, b2, *,
                    tile_n=4096, vmem_limit_bytes=32 * 1024 * 1024):
    """Returns (outputs, loss, loss_stats) exactly like ModelWithLoss.forward."""
    n, d = x.shape
    h = w1.shape[1]

    # ---------------- wrapper-side layout plumbing (fused cheap XLA ops) ----
    tile_n = min(int(tile_n), _round_up(n, _LANE))
    tile_n = _round_up(tile_n, _LANE)                 # lane-dense tiles
    n_pad = _round_up(n, tile_n)
    num_tiles = n_pad // tile_n
    d_pad = _round_up(d, _SUBLANE)                    # feature dims live on
    h_pad = _round_up(h, _SUBLANE)                    # sublanes -> pad to 8 only

    # Batch on the lane axis: full 128-lane occupancy even with D = H = 32,
    # lane-dense outputs, and no padding of the (dominant) x stream to 128.
    xT = jnp.zeros((d_pad, n_pad), jnp.bfloat16)
    xT = xT.at[:d, :n].set(x.astype(jnp.bfloat16).T)
    yT = jnp.zeros((1, n_pad), jnp.float32)
    yT = yT.at[0, :n].set(y.reshape(-1).astype(jnp.float32))

    w1T = jnp.zeros((h_pad, d_pad), jnp.bfloat16)
    w1T = w1T.at[:h, :d].set(w1.astype(jnp.bfloat16).T)
    b1c = jnp.zeros((h_pad, 1), jnp.float32).at[:h, 0].set(
        b1.reshape(-1).astype(jnp.float32))
    w2c = jnp.zeros((h_pad, 1), jnp.float32).at[:h, 0].set(
        w2.reshape(-1).astype(jnp.float32))
    b2s = jnp.reshape(b2, (1, 1)).astype(jnp.float32)

    cost = pl.CostEstimate(
        flops=2 * h_pad * d_pad * n_pad + 4 * h_pad * n_pad + 10 * n_pad,
        transcendentals=2 * n_pad,                       # exp + log per sample
        bytes_accessed=(xT.size * 2 + yT.size * 4 + w1T.size * 2
                        + b1c.size * 4 + w2c.size * 4 + 4
                        + 2 * n_pad * 4),
    )

    logits_row, loss_row = pl.pallas_call(
        _fused_mlp_bce_kernel,
        grid=(num_tiles,),
        in_specs=[
            pl.BlockSpec((d_pad, tile_n), lambda i: (0, i)),    # xT (streamed)
            pl.BlockSpec((1, tile_n), lambda i: (0, i)),        # yT (streamed)
            pl.BlockSpec((h_pad, d_pad), lambda i: (0, 0)),     # W1^T (resident)
            pl.BlockSpec((h_pad, 1), lambda i: (0, 0)),         # b1
            pl.BlockSpec((h_pad, 1), lambda i: (0, 0)),         # w2 column
            pl.BlockSpec(memory_space=pltpu.MemorySpace.SMEM),  # b2 scalar
        ],
        out_specs=(
            pl.BlockSpec((1, tile_n), lambda i: (0, i)),        # logits (lane-dense)
            pl.BlockSpec((1, tile_n), lambda i: (0, i)),        # per-sample loss
        ),
        out_shape=(
            jax.ShapeDtypeStruct((1, n_pad), jnp.float32),
            jax.ShapeDtypeStruct((1, n_pad), jnp.float32),
        ),
        compiler_params=pltpu.CompilerParams(
            dimension_semantics=("parallel",),   # no cross-tile state -> both TCs
            vmem_limit_bytes=vmem_limit_bytes,   # tiles are tiny; fits v5e/v6e/v7x
        ),
        cost_estimate=cost,
    )(xT, yT, w1T, b1c, w2c, b2s)

    # Finish the mean reduction in the wrapper (padded columns excluded).
    outputs = logits_row[0, :n].reshape(n, 1)
    loss = jnp.sum(loss_row[0, :n]) * (1.0 / float(n))
    loss_stats = {"loss": loss}
    # Same 3-tuple contract as the PyTorch ModelWithLoss.forward.
    return outputs, loss, loss_stats
    # TODO(synk): the `len(self.gpus) > 1` branch (torch.cat over per-GPU
    # batch.y) is a host-side data-parallel concat, not kernel compute; the
    # single-device path (y = batch.y) is what is implemented here.


if __name__ == "__main__":
    # Small shapes implied by the forward: N samples, D input features,
    # H hidden units, one logit / label per sample.
    N, D, H = 8, 32, 32

    key = jax.random.PRNGKey(0)
    kx, ky, k1, k2, k3, k4 = jax.random.split(key, 6)

    x = jax.random.normal(kx, (N, D), dtype=jnp.float32)
    y = (jax.random.uniform(ky, (N, 1)) > 0.5).astype(jnp.float32)

    w1 = jax.random.normal(k1, (D, H), dtype=jnp.float32) * (1.0 / jnp.sqrt(D))
    b1 = jax.random.normal(k2, (1, H), dtype=jnp.float32) * 0.01
    w2 = jax.random.normal(k3, (H, 1), dtype=jnp.float32) * (1.0 / jnp.sqrt(H))
    b2 = jax.random.normal(k4, (1, 1), dtype=jnp.float32) * 0.01

    outputs, loss, loss_stats = model_with_loss(x, y, w1, b1, w2, b2)
    jax.block_until_ready((outputs, loss))

    # Pure-JAX reference with the same bf16 MXU feed (epilogue in f32).
    xb = x.astype(jnp.bfloat16)
    w1b = w1.astype(jnp.bfloat16)
    h_ref = jnp.maximum(
        jnp.dot(xb, w1b, preferred_element_type=jnp.float32) + b1, 0.0)
    z_ref = h_ref @ w2 + b2
    loss_ref = jnp.mean(jnp.maximum(z_ref, 0.0) - z_ref * y
                        + jnp.log1p(jnp.exp(-jnp.abs(z_ref))))

    assert outputs.shape == (N, 1)
    assert jnp.allclose(outputs, z_ref, atol=1e-3, rtol=1e-3)
    assert jnp.allclose(loss, loss_ref, atol=1e-3, rtol=1e-3)
    assert jnp.allclose(loss_stats["loss"], loss_ref, atol=1e-3, rtol=1e-3)

    print("KERNEL_OK")
</pallas_src>

<mosaic_0001>
module attributes {stable_mosaic.version = 11 : i64} {
  func.func @_fused_mlp_bce_kernel(%arg0: i32, %arg1: memref<32x128xbf16, #tpu.memory_space<vmem>>, %arg2: memref<1x128xf32, #tpu.memory_space<vmem>>, %arg3: memref<32x32xbf16, #tpu.memory_space<vmem>>, %arg4: memref<32x1xf32, #tpu.memory_space<vmem>>, %arg5: memref<32x1xf32, #tpu.memory_space<vmem>>, %arg6: memref<1x1xf32, #tpu.memory_space<smem>>, %arg7: memref<1x128xf32, #tpu.memory_space<vmem>>, %arg8: memref<1x128xf32, #tpu.memory_space<vmem>>) attributes {dimension_semantics = [#tpu.dimension_semantics<parallel>], iteration_bounds = array<i64: 1>, scalar_prefetch = 0 : i64, scratch_operands = 0 : i64, tpu.core_type = #tpu.core_type<tc>, window_params = [{transform_indices = @transform_0, window_bounds = array<i64: 32, 128>}, {transform_indices = @transform_1, window_bounds = array<i64: 1, 128>}, {pipeline_mode = #tpu.pipeline_mode<synchronous>, transform_indices = @transform_2, window_bounds = array<i64: 32, 32>}, {pipeline_mode = #tpu.pipeline_mode<synchronous>, transform_indices = @transform_3, window_bounds = array<i64: 32, 1>}, {pipeline_mode = #tpu.pipeline_mode<synchronous>, transform_indices = @transform_4, window_bounds = array<i64: 32, 1>}, {transform_indices = @transform_5, window_bounds = array<i64: 1, 1>}, {transform_indices = @transform_6, window_bounds = array<i64: 1, 128>}, {transform_indices = @transform_7, window_bounds = array<i64: 1, 128>}]} {
    %c0 = arith.constant 0 : index
    %c0_0 = arith.constant 0 : index
    %0 = vector.load %arg3[%c0, %c0_0] : memref<32x32xbf16, #tpu.memory_space<vmem>>, vector<32x32xbf16>
    %c0_1 = arith.constant 0 : index
    %c0_2 = arith.constant 0 : index
    %1 = vector.load %arg1[%c0_1, %c0_2] : memref<32x128xbf16, #tpu.memory_space<vmem>>, vector<32x128xbf16>
    %cst = arith.constant dense<0.000000e+00> : vector<32x128xf32>
    %2 = tpu.matmul %0, %1, %cst {dimension_numbers = #tpu.dot_dimension_numbers<[1], [0], [0], [1], [0, 0, 1, 1], [], []>} : vector<32x32xbf16>, vector<32x128xbf16>, vector<32x128xf32> -> vector<32x128xf32>
    %c0_3 = arith.constant 0 : index
    %c0_4 = arith.constant 0 : index
    %3 = vector.load %arg4[%c0_3, %c0_4] : memref<32x1xf32, #tpu.memory_space<vmem>>, vector<32x1xf32>
    %4 = vector.broadcast %3 : vector<32x1xf32> to vector<32x128xf32>
    %5 = arith.addf %2, %4 : vector<32x128xf32>
    %cst_5 = arith.constant 0.000000e+00 : f32
    %6 = vector.broadcast %cst_5 : f32 to vector<32x128xf32>
    %7 = arith.maximumf %5, %6 : vector<32x128xf32>
    %c0_6 = arith.constant 0 : index
    %c0_7 = arith.constant 0 : index
    %8 = vector.load %arg5[%c0_6, %c0_7] : memref<32x1xf32, #tpu.memory_space<vmem>>, vector<32x1xf32>
    %9 = vector.broadcast %8 : vector<32x1xf32> to vector<32x128xf32>
    %10 = arith.mulf %7, %9 : vector<32x128xf32>
    %cst_8 = arith.constant dense<0.000000e+00> : vector<128xf32>
    %11 = vector.multi_reduction <add>, %10, %cst_8 [0] : vector<32x128xf32> to vector<128xf32>
    %12 = vector.shape_cast %11 : vector<128xf32> to vector<1x128xf32>
    %c0_9 = arith.constant 0 : index
    %c0_10 = arith.constant 0 : index
    %13 = memref.load %arg6[%c0_9, %c0_10] : memref<1x1xf32, #tpu.memory_space<smem>>
    %14 = vector.broadcast %13 : f32 to vector<1x128xf32>
    %15 = arith.addf %12, %14 : vector<1x128xf32>
    %c0_11 = arith.constant 0 : index
    %c0_12 = arith.constant 0 : index
    %16 = vector.load %arg7[%c0_11, %c0_12] : memref<1x128xf32, #tpu.memory_space<vmem>>, vector<1x128xf32>
    tpu.vector_store %arg7[%c0_11, %c0_12], %15 {strides = array<i32>} : memref<1x128xf32, #tpu.memory_space<vmem>>, vector<1x128xf32>,
    %17 = math.absf %15 : vector<1x128xf32>
    %cst_13 = arith.constant 0.000000e+00 : f32
    %18 = vector.broadcast %cst_13 : f32 to vector<1x128xf32>
    %19 = arith.subf %18, %17 : vector<1x128xf32>
    %20 = math.exp %19 : vector<1x128xf32>
    %cst_14 = arith.constant 1.000000e+00 : f32
    %21 = vector.broadcast %cst_14 : f32 to vector<1x128xf32>
    %22 = arith.addf %21, %20 : vector<1x128xf32>
    %23 = math.log %22 : vector<1x128xf32>
    %cst_15 = arith.constant 1.000000e+00 : f32
    %24 = vector.broadcast %cst_15 : f32 to vector<1x128xf32>
    %25 = arith.subf %22, %24 : vector<1x128xf32>
    %26 = arith.subf %25, %20 : vector<1x128xf32>
    %27 = arith.divf %26, %22 : vector<1x128xf32>
    %28 = arith.subf %23, %27 : vector<1x128xf32>
    %c0_16 = arith.constant 0 : index
    %c0_17 = arith.constant 0 : index
    %29 = vector.load %arg2[%c0_16, %c0_17] : memref<1x128xf32, #tpu.memory_space<vmem>>, vector<1x128xf32>
    %cst_18 = arith.constant 0.000000e+00 : f32
    %30 = vector.broadcast %cst_18 : f32 to vector<1x128xf32>
    %31 = arith.maximumf %15, %30 : vector<1x128xf32>
    %32 = arith.mulf %15, %29 : vector<1x128xf32>
    %33 = arith.subf %31, %32 : vector<1x128xf32>
    %34 = arith.addf %33, %28 : vector<1x128xf32>
    %c0_19 = arith.constant 0 : index
    %c0_20 = arith.constant 0 : index
    %35 = vector.load %arg8[%c0_19, %c0_20] : memref<1x128xf32, #tpu.memory_space<vmem>>, vector<1x128xf32>
    tpu.vector_store %arg8[%c0_19, %c0_20], %34 {strides = array<i32>} : memref<1x128xf32, #tpu.memory_space<vmem>>, vector<1x128xf32>,
    return
  }
  func.func @transform_0(%arg0: i32) -> (i32, i32) {
    %c0_i32 = arith.constant 0 : i32
    %c0_i32_0 = arith.constant 0 : i32
    return %c0_i32, %arg0 : i32, i32
  }
  func.func @transform_1(%arg0: i32) -> (i32, i32) {
    %c0_i32 = arith.constant 0 : i32
    %c0_i32_0 = arith.constant 0 : i32
    return %c0_i32, %arg0 : i32, i32
  }
  func.func @transform_2(%arg0: i32) -> (i32, i32) {
    %c0_i32 = arith.constant 0 : i32
    %c0_i32_0 = arith.constant 0 : i32
    %c0_i32_1 = arith.constant 0 : i32
    return %c0_i32, %c0_i32_0 : i32, i32
  }
  func.func @transform_3(%arg0: i32) -> (i32, i32) {
    %c0_i32 = arith.constant 0 : i32
    %c0_i32_0 = arith.constant 0 : i32
    %c0_i32_1 = arith.constant 0 : i32
    return %c0_i32, %c0_i32_0 : i32, i32
  }
  func.func @transform_4(%arg0: i32) -> (i32, i32) {
    %c0_i32 = arith.constant 0 : i32
    %c0_i32_0 = arith.constant 0 : i32
    %c0_i32_1 = arith.constant 0 : i32
    return %c0_i32, %c0_i32_0 : i32, i32
  }
  func.func @transform_5(%arg0: i32) -> (i32, i32) {
    %c0_i32 = arith.constant 0 : i32
    %c0_i32_0 = arith.constant 0 : i32
    %c0_i32_1 = arith.constant 0 : i32
    return %c0_i32, %c0_i32_0 : i32, i32
  }
  func.func @transform_6(%arg0: i32) -> (i32, i32) {
    %c0_i32 = arith.constant 0 : i32
    %c0_i32_0 = arith.constant 0 : i32
    return %c0_i32, %arg0 : i32, i32
  }
  func.func @transform_7(%arg0: i32) -> (i32, i32) {
    %c0_i32 = arith.constant 0 : i32
    %c0_i32_0 = arith.constant 0 : i32
    return %c0_i32, %arg0 : i32, i32
  }
}

</mosaic_0001>

<bundles_post_ra>
// kernel: tpu_custom_call.1
= control target key start
LH: loop header
LB: loop body
LE: loop exit
PB: predicated region body
PF: predicated region fallthrough
CT: control target
= control target key end

     0   :  { %14 = vsyncpa [#allocation4], 0  ;;  %vm83_vm0 = vcmask 261120   ;;  %v312_v3 = vmov 0   ;;  %s423_s0 = inlined_call_operand.vmem [shape: bf16[32,128], index: 0, kind: input, shape index: {}]   ;;  %s424_s1 = inlined_call_operand.vmem [shape: f32[1,128], index: 1, kind: input, shape index: {}]   ;;  %s425_s2 = inlined_call_operand.vmem [shape: bf16[32,32], index: 2, kind: input, shape index: {}]   ;;  %s426_s3 = inlined_call_operand.vmem [shape: f32[32,1], index: 3, kind: input, shape index: {}]   ;;  %s427_s4 = inlined_call_operand.vmem [shape: f32[32,1], index: 4, kind: input, shape index: {}]   ;;  %s428_s5 = inlined_call_operand.<no memory space> [shape: f32[1,1], index: 5, kind: input, shape index: {}]   ;;  %s429_s6 = inlined_call_operand.hbm [shape: f32[1,128], index: 6, kind: output, shape index: {0}]   ;;  %s430_s7 = inlined_call_operand.hbm [shape: f32[1,128], index: 7, kind: output, shape index: {1}]  }
   0x1   :  { %v254_v0 = vld [vmem:[%s423_s0] sm:$0xff]   ;;  %v255_v1 = vld [vmem:[%s423_s0 + $0x8] sm:$0xff]   ;;  %252 = vset.pattern.permute.xlu0 %v312_v3  ;;  %253 = vset.pattern.permute.xlu1 %v312_v3  ;;  %v39_v5 = vld [vmem:[%s426_s3 + $0x10] sm:$0xff] }
   0x2   :  { %241 = vmatprep.subr.bf16.mxu0 %v254_v0  ;;  %v256_v2 = vld [vmem:[%s425_s2] sm:$0xff]   ;;  %v257_v6 = vld [vmem:[%s425_s2 + $0x8] sm:$0xff]   ;;  %53 = vperm.xlu1 %253, %v39_v5   ;;  %v40_v8 = vld [vmem:[%s426_s3 + $0x18] sm:$0xff] }
   0x3   :  { %242 = vmatpush3.bf16.msra.mxu0 %v254_v0  ;;  %245 = vmatprep.mubr.msk.bf16.mxu0 %vm83_vm0, %v256_v2  ;;  %v37_v4 = vld [vmem:[%s426_s3] sm:$0xff]  ;;  %v38_v7 = vld [vmem:[%s426_s3 + $0x8] sm:$0xff] }
   0x4   :  { %243 = vmatprep.subr.bf16.mxu0 %v255_v1  ;;  %43 = vperm.xlu0 %252, %v37_v4  }
   0x5   :  { %15 = vsyncpa [#allocation6], 0  ;;  %v143_v9 = vld [vmem:[%s427_s4] sm:$0xff]  ;;  %v144_v10 = vld [vmem:[%s427_s4 + $0x8] sm:$0xff]  ;;  %v181_v45 = vstv %s428_s5  ;;  %s313_s23 = smov [#allocation3]  }
   0x6   :  { %58 = vperm.xlu1 %253, %v40_v8   ;;  %v145_v11 = vld [vmem:[%s427_s4 + $0x10] sm:$0xff]  ;;  %v146_v12 = vld [vmem:[%s427_s4 + $0x18] sm:$0xff]  ;;  %s208_s24 = sshll.u32 %s313_s23, 4  ;;  %s209_s24 = int_to_ptr.vmem [resolvable:$true] %s208_s24 }
   0x7   :  { %244 = vmatpush3.bf16.msra.mxu0 %v255_v1  ;;  %s264_s25 = scalar_lea.vmem %s209_s24, 16  ;;  %s268_s26 = scalar_lea.vmem %s209_s24, 32 }
   0x8   :  { %48 = vperm.xlu0 %252, %v38_v7   ;;  %p265_p0 = scmp.ne.s32.totalorder %s209_s24, %s264_s25  ;;  %p269_p1 = scmp.lt.s32.totalorder %s209_s24, %s209_s24 }
   0x9   :  { %p270_p2 = scmp.lt.s32.totalorder %s268_s26, %s264_s25 }
   0xa   :  { %246 = vmatmul.mubr.msk.bf16.vlgmr.msra.gmra.mrb[0].mxu0 %vm83_vm0, %v257_v6  ;;  %154 = vperm.xlu1 %253, %v144_v10  }
   0xb   :  { %p271_p3 = por %p270_p2, %p269_p1 }
   0xc   :  { %149 = vperm.xlu0 %252, %v143_v9  }
   0xd   :  { %p272_p4 = pnand %p271_p3, %p265_p0 }
   0xe   :  { %164 = vperm.xlu1 %253, %v146_v12  }
  0x10   :  { %159 = vperm.xlu0 %252, %v145_v11  }
  0x81   :  { %v54_v14 = vpop.permute.xlu1 %53 }
  0x83   :  { %v44_v13 = vpop.permute.xlu0 %43 }
  0x85   :  { %v59_v16 = vpop.permute.xlu1 %58 }
  0x87   :  { %v49_v15 = vpop.permute.xlu0 %48 }
  0x89   :  { %v155_v27 = vpop.permute.xlu1 %154 }
  0x8b   :  { %v150_v22 = vpop.permute.xlu0 %149 }
  0x8d   :  { %v165_v36 = vpop.permute.xlu1 %164 }
  0x8f   :  { %v160_v33 = vpop.permute.xlu0 %159 }
  0xdd   :  { %v247_v17 = vpop.f32.mrb[0].mxu0 }
  0xde   :  { %v124_v18 = vpop.f32.mrb[1].mxu0  ;;  %v133_v19 = vadd.f32 %v247_v17, %v54_v14 }
  0xdf   :  { %v125_v20 = vadd.f32 %v124_v18, %v44_v13  ;;  %v248_v21 = vpop.f32.mrb[2].mxu0 }
  0xe0   :  { %v127_v23 = vpop.f32.mrb[3].mxu0  ;;  %v136_v25 = vadd.f32 %v248_v21, %v59_v16  ;;  %v141_v28 = vmax.f32 %v133_v19, 0.0 }
  0xe1   :  { %v139_v24 = vmax.f32 %v125_v20, 0.0  ;;  %v128_v26 = vadd.f32 %v127_v23, %v49_v15 }
  0xe2   :  { %v142_v31 = vmax.f32 %v136_v25, 0.0  ;;  %v169_v34 = vmul.f32 %v160_v33, %v141_v28 }
  0xe3   :  { %v140_v29 = vmax.f32 %v128_v26, 0.0  ;;  %v167_v30 = vmul.f32 %v150_v22, %v139_v24 }
  0xe4   :  { %v170_v37 = vmul.f32 %v165_v36, %v142_v31 }
  0xe5   :  { %v168_v32 = vmul.f32 %v155_v27, %v140_v29 }
  0xe7   :  { %v171_v35 = vadd.f32 %v168_v32, %v167_v30 }
  0xe9   :  { %v172_v38 = vadd.f32 %v171_v35, %v169_v34 }
  0xeb   :  { %v173_v39 = vadd.f32 %v172_v38, %v170_v37 }
  0xed   :  { %v174_v40 = vrot.slane %v173_v39, 4 }
  0xef   :  { %v175_v41 = vadd.f32 %v174_v40, %v173_v39 }
  0xf1   :  { %v176_v42 = vrot.slane %v175_v41, 2 }
  0xf3   :  { %v177_v43 = vadd.f32 %v176_v42, %v175_v41 }
  0xf5   :  { %v178_v44 = vrot.slane %v177_v43, 1 }
  0xf7   :  { %v179_v46 = vadd.f32 %v178_v44, %v177_v43 }
  0xf9   :  { %v182_v47 = vadd.f32 %v181_v45, %v179_v46 }
  0xfb   :  { %183 = vst [vmem:[#allocation3] sm:$0x1] %v182_v47  ;;  %v184_v48 = vand.u32 2147483647, %v182_v47 }
  0xfc   :  { %275 = shalt.err (!%p272_p4)
}
  0xfd   :  { %s276_s29 = scalar_lea.hbm %s429_s6, 16 }
  0xfe   :  { %p277_p5 = scmp.ne.s32.totalorder %s429_s6, %s276_s29  ;;  %p280_p6 = scmp.lt.u32.totalorder %s276_s29, %s429_s6 }
 0x100   :  { %p282_p7 = pnand %p280_p6, %p277_p5 }
 0x102   :  { %285 = shalt.err (!%p282_p7)
}
 0x103   :  { %211 = dma.vmem_to_hbm [thread:$0]  %s209_s24, 16, %s429_s6, [#allocation4]   ;;  %v185_v49 = vsub.f32 0.0, %v184_v48  ;;  %v196_v54 = vld [vmem:[%s424_s1] sm:$0x1]  ;;  %v197_v57 = vmax.f32 %v182_v47, 0.0 }
 0x104   :  { %v198_v58 = vmul.f32 %v196_v54, %v182_v47  ;;  %s314_s6 = smov [#allocation5]  }
 0x105   :  { %v186_v50 = vmul.f32 1.442695, %v185_v49  ;;  %s218_s13 = sshll.u32 %s314_s6, 4  ;;  %s219_s13 = int_to_ptr.vmem [resolvable:$true] %s218_s13 }
 0x106   :  { %v199_v63 = vsub.f32 %v197_v57, %v198_v58  ;;  %s286_s14 = scalar_lea.vmem %s219_s13, 16  ;;  %s290_s15 = scalar_lea.vmem %s219_s13, 32 }
 0x107   :  { %258 = vpow2.f32 %v186_v50  ;;  %p287_p8 = scmp.ne.s32.totalorder %s219_s13, %s286_s14  ;;  %p291_p9 = scmp.lt.s32.totalorder %s219_s13, %s219_s13 }
 0x108   :  { %p292_p10 = scmp.lt.s32.totalorder %s290_s15, %s286_s14 }
 0x10a   :  { %p293_p11 = por %p292_p10, %p291_p9 }
 0x10c   :  { %p294_p12 = pnand %p293_p11, %p287_p8 }
 0x111   :  { %v259_v51 = vpop.eup %258 }
 0x112   :  { %v188_v52 = vadd.f32 1.0, %v259_v51 }
 0x114   :  { %260 = vlog2.f32 %v188_v52  ;;  %v236_v53 = vadd.f32 -1.0, %v188_v52 }
 0x115   :  { %262 = vrcp.f32 %v188_v52 }
 0x116   :  { %v192_v56 = vsub.f32 %v236_v53, %v259_v51 }
 0x11e   :  { %v261_v55 = vpop.eup %260 }
 0x11f   :  { %v263_v59 = vpop.eup %262  ;;  %v190_v60 = vmul.f32 0.6931472, %v261_v55 }
 0x120   :  { %v194_v61 = vmul.f32 %v263_v59, %v192_v56 }
 0x122   :  { %v195_v62 = vsub.f32 %v190_v60, %v194_v61 }
 0x124   :  { %v200_v0 = vadd.f32 %v199_v63, %v195_v62 }
 0x126   :  { %201 = vst [vmem:[#allocation5] sm:$0x1] %v200_v0 }
 0x127   :  { %297 = shalt.err (!%p294_p12)
}
 0x128   :  { %s298_s17 = scalar_lea.hbm %s430_s7, 16 }
 0x129   :  { %p299_p13 = scmp.ne.s32.totalorder %s430_s7, %s298_s17  ;;  %p302_p0 = scmp.lt.u32.totalorder %s298_s17, %s430_s7 }
 0x12b   :  { %p304_p1 = pnand %p302_p0, %p299_p13 }
 0x12d   :  { %307 = shalt.err (!%p304_p1)
}
 0x12e   :  { %221 = dma.vmem_to_hbm [thread:$0]  %s219_s13, 16, %s430_s7, [#allocation6]  }
 0x12f   :  { %308 = dma.done.wait [#allocation4], 16  }
 0x130   :  { %309 = vsyncadd [#allocation4], 4294967280 }
 0x131   :  { %310 = dma.done.wait [#allocation6], 16  }
 0x132   :  { %311 = vsyncadd [#allocation6], 4294967280 }
 0x133   :  { %228 = vsyncpa [#allocation4], 1 }
 0x134   :  { %229 = vsyncpa [#allocation6], 1 }

</bundles_post_ra>
